<compile_context>
chip_gen: v5e
topology: v5e:2x2
jax: 0.10.0
libtpu: 0.0.40
codegen_flags: <defaults>
</compile_context>

<pallas_src>
import functools

import numpy as np
import jax
import jax.numpy as jnp
from jax import lax
from jax.experimental import pallas as pl
from jax.experimental.pallas import tpu as pltpu


def _round_up(x, m):
    return ((x + m - 1) // m) * m


def _vmem_limit_bytes():
    # v7x has 64 MiB physical VMEM per TC, v5e/v6e have 128 MiB; request ~3/4
    # of physical (capped) so the chosen tiles fit on every generation.
    try:
        cap = pltpu.get_tpu_info().vmem_capacity_bytes
    except Exception:
        cap = 64 * 1024 * 1024
    return int(min(cap * 3 // 4, 96 * 1024 * 1024))


def _down_sampling_kernel(pred_ref, tgt_ref, out_ref,
                          bce_scr, maj_scr, rank_scr, acc_scr,
                          *, batch_real, chunk, n_chunks):
    x = pred_ref[...].astype(jnp.float32)        # [B_pad, C_TILE] logits
    t = tgt_ref[...].astype(jnp.float32)         # [B_pad, C_TILE] targets in {0,1}
    b_pad, c_tile = x.shape

    # Valid-batch mask: padded rows must never get a weight.
    b_idx = lax.broadcasted_iota(jnp.int32, (b_pad, 1), 0)
    bvalid = (b_idx < batch_real).astype(jnp.float32)            # [B_pad, 1]

    # BCEWithLogitsLoss(reduction='none'), numerically stable form.
    bce = jnp.maximum(x, 0.0) - x * t + jnp.log(1.0 + jnp.exp(-jnp.abs(x)))

    # Per-class majority label (ties -> positive, i.e. pos_sum >= neg_sum).
    pos = jnp.sum(t, axis=0, keepdims=True)                      # [1, C_TILE]
    maj = jnp.where(2.0 * pos >= float(batch_real), 1.0, 0.0)    # [1, C_TILE]

    is_maj = jnp.where(t == maj, bvalid, 0.0)                    # [B_pad, C_TILE]
    is_min = jnp.where(t != maj, bvalid, 0.0)                    # [B_pad, C_TILE]
    n_min = jnp.sum(is_min, axis=0, keepdims=True)               # [1, C_TILE]

    bce_scr[...] = bce
    maj_scr[...] = is_maj
    acc_scr[...] = jnp.zeros_like(acc_scr)

    # Chunk-local pair indices for the stable tie-break, hoisted out of the
    # loops (JAX does not CSE broadcast/iota).
    ki_l = lax.broadcasted_iota(jnp.int32, (chunk, chunk, 1), 0)   # k within chunk
    ji_l = lax.broadcasted_iota(jnp.int32, (chunk, chunk, 1), 1)   # j within chunk

    @pl.loop(0, n_chunks)
    def _j_loop(jc):
        j0 = pl.multiple_of(jc * chunk, chunk)
        bce_j = bce_scr[pl.ds(j0, chunk), :]                     # [CHUNK, C_TILE]
        maj_j = maj_scr[pl.ds(j0, chunk), :]                     # [CHUNK, C_TILE]
        rank_scr[...] = jnp.zeros_like(rank_scr)

        @pl.loop(0, n_chunks)
        def _k_loop(kc):
            k0 = pl.multiple_of(kc * chunk, chunk)
            bce_k = bce_scr[pl.ds(k0, chunk), :]                 # [CHUNK, C_TILE]
            maj_k = maj_scr[pl.ds(k0, chunk), :]                 # [CHUNK, C_TILE]

            lk = bce_k[:, None, :]                               # [CK, 1, C]
            lj = bce_j[None, :, :]                               # [1, CJ, C]
            # global k index < global j index  (stable descending-sort tie-break)
            tie = (ki_l + (k0 - j0)) < ji_l                      # [CK, CJ, 1]
            harder = jnp.logical_or(lk > lj,
                                    jnp.logical_and(lk == lj, tie))  # [CK, CJ, C]
            beats = jnp.where(harder, maj_k[:, None, :], 0.0)    # [CK, CJ, C]
            # Reduce over the leading (k) axis -> pure vector adds, no XLU
            # lane reduction, result already in [batch_j, class] layout.
            rank_scr[...] += jnp.sum(beats, axis=0)              # [CJ, C]

        # Keep every minority sample + the n_min hardest majority samples.
        jb = j0 + lax.broadcasted_iota(jnp.int32, (chunk, 1), 0)
        bvalid_j = (jb < batch_real).astype(jnp.float32)         # [CHUNK, 1]
        min_j = bvalid_j - maj_j                                 # [CHUNK, C_TILE]
        keep_j = min_j + maj_j * (rank_scr[...] < n_min).astype(jnp.float32)
        contrib = bce_j * keep_j                                 # [CHUNK, C_TILE]
        # Fold the sublane axis down to 8 (leading-axis reduce, VALU only).
        acc_scr[...] += jnp.sum(
            contrib.reshape(chunk // 8, 8, c_tile), axis=0)      # [8, C_TILE]

    out_ref[0] = acc_scr[...]


def down_sampling_loss(pred, target):
    """pred, target: [batch, class]. Returns the scalar DownSampling loss."""
    B, C = pred.shape
    assert target.shape == (B, C)

    C_TILE = 128          # classes per grid step (lane axis)
    CHUNK_MAX = 64        # batch chunk for the pairwise ranking (sublane axis)

    if B <= CHUNK_MAX:
        chunk = _round_up(B, 8)
        B_pad = chunk
    else:
        chunk = CHUNK_MAX
        B_pad = _round_up(B, chunk)
    n_chunks = B_pad // chunk

    C_pad = _round_up(C, C_TILE)
    n_class_tiles = C_pad // C_TILE

    # Zero padding: padded classes end up with all-zero weights (pos_sum=0 ->
    # majority=0 -> n_min=0), padded batch rows are masked in-kernel.
    pred_p = jnp.pad(pred.astype(jnp.float32), ((0, B_pad - B), (0, C_pad - C)))
    tgt_p = jnp.pad(target.astype(jnp.float32), ((0, B_pad - B), (0, C_pad - C)))

    kernel = functools.partial(
        _down_sampling_kernel, batch_real=B, chunk=chunk, n_chunks=n_chunks)

    partials = pl.pallas_call(
        kernel,
        out_shape=jax.ShapeDtypeStruct((n_class_tiles, 8, C_TILE), jnp.float32),
        grid_spec=pltpu.PrefetchScalarGridSpec(
            num_scalar_prefetch=0,
            grid=(n_class_tiles,),
            in_specs=[
                pl.BlockSpec((B_pad, C_TILE), lambda ct: (0, ct)),
                pl.BlockSpec((B_pad, C_TILE), lambda ct: (0, ct)),
            ],
            out_specs=pl.BlockSpec((1, 8, C_TILE), lambda ct: (ct, 0, 0)),
            scratch_shapes=[
                pltpu.VMEM((B_pad, C_TILE), jnp.float32),   # bce
                pltpu.VMEM((B_pad, C_TILE), jnp.float32),   # is_majority (0/1)
                pltpu.VMEM((chunk, C_TILE), jnp.float32),   # per-j-chunk ranks
                pltpu.VMEM((8, C_TILE), jnp.float32),       # partial-sum acc
            ]),
        compiler_params=pltpu.CompilerParams(
            dimension_semantics=("parallel",),
            vmem_limit_bytes=_vmem_limit_bytes()),
    )(pred_p, tgt_p)

    return jnp.sum(partials) / float(B * C)


def _reference(pred, target):
    """Pure-numpy mirror of the PyTorch forward pass (for verification)."""
    pred = np.asarray(pred, dtype=np.float32)
    target = np.asarray(target, dtype=np.float32)
    B, C = pred.shape
    bce = np.maximum(pred, 0.0) - pred * target + np.log(1.0 + np.exp(-np.abs(pred)))
    weights = np.zeros_like(pred)
    pos_sum = target.sum(0)
    pos_gt = (pos_sum >= (B - pos_sum)).astype(np.float32)
    for i in range(C):
        maj = np.where(target[:, i] == pos_gt[i])[0]
        mino = np.where(target[:, i] != pos_gt[i])[0]
        order = maj[np.argsort(-bce[maj, i], kind="stable")]
        weights[order[: len(mino)], i] = 1.0
        if len(mino) > 0:
            weights[mino, i] = 1.0
    return float((bce.astype(np.float64) * weights).mean())


if __name__ == "__main__":
    key = jax.random.PRNGKey(0)
    k1, k2, k3, k4 = jax.random.split(key, 4)

    # Small case (module-consistent [batch_num, class_num] inputs).
    B, C = 8, 4
    pred = jax.random.normal(k1, (B, C), dtype=jnp.float32)
    target = (jax.random.uniform(k2, (B, C)) > 0.4).astype(jnp.float32)
    out = jax.block_until_ready(down_sampling_loss(pred, target))
    ref = _reference(np.asarray(pred), np.asarray(target))
    assert np.allclose(np.asarray(out), ref, rtol=1e-5, atol=1e-6), (float(out), ref)

    # Larger, unaligned case: exercises class-axis tiling (grid > 1), the
    # chunked pairwise ranking, and the batch/class padding masks.
    B2, C2 = 200, 193
    pred2 = jax.random.normal(k3, (B2, C2), dtype=jnp.float32)
    target2 = (jax.random.uniform(k4, (B2, C2)) > 0.35).astype(jnp.float32)
    out2 = jax.block_until_ready(down_sampling_loss(pred2, target2))
    ref2 = _reference(np.asarray(pred2), np.asarray(target2))
    assert np.allclose(np.asarray(out2), ref2, rtol=1e-4, atol=1e-5), (float(out2), ref2)

    print("KERNEL_OK")
</pallas_src>

<mosaic_0001>
module attributes {stable_mosaic.version = 11 : i64} {
  func.func @_down_sampling_kernel(%arg0: i32, %arg1: memref<8x128xf32, #tpu.memory_space<vmem>>, %arg2: memref<8x128xf32, #tpu.memory_space<vmem>>, %arg3: memref<1x8x128xf32, #tpu.memory_space<vmem>>, %arg4: memref<8x128xf32, #tpu.memory_space<vmem>>, %arg5: memref<8x128xf32, #tpu.memory_space<vmem>>, %arg6: memref<8x128xf32, #tpu.memory_space<vmem>>, %arg7: memref<8x128xf32, #tpu.memory_space<vmem>>) attributes {dimension_semantics = [#tpu.dimension_semantics<parallel>], iteration_bounds = array<i64: 1>, scalar_prefetch = 0 : i64, scratch_operands = 4 : i64, tpu.core_type = #tpu.core_type<tc>, window_params = [{transform_indices = @transform_0, window_bounds = array<i64: 8, 128>}, {transform_indices = @transform_1, window_bounds = array<i64: 8, 128>}, {transform_indices = @transform_2, window_bounds = array<i64: 1, 8, 128>}]} {
    %c0 = arith.constant 0 : index
    %c0_0 = arith.constant 0 : index
    %0 = vector.load %arg1[%c0, %c0_0] : memref<8x128xf32, #tpu.memory_space<vmem>>, vector<8x128xf32>
    %c0_1 = arith.constant 0 : index
    %c0_2 = arith.constant 0 : index
    %1 = vector.load %arg2[%c0_1, %c0_2] : memref<8x128xf32, #tpu.memory_space<vmem>>, vector<8x128xf32>
    %2 = tpu.iota {dimensions = array<i32: 0>} : vector<8x1xi32>
    %c8_i32 = arith.constant 8 : i32
    %3 = vector.broadcast %c8_i32 : i32 to vector<8x1xi32>
    %4 = arith.cmpi slt, %2, %3 : vector<8x1xi32>
    %5 = arith.extui %4 : vector<8x1xi1> to vector<8x1xi32>
    %6 = arith.sitofp %5 : vector<8x1xi32> to vector<8x1xf32>
    %cst = arith.constant 0.000000e+00 : f32
    %7 = vector.broadcast %cst : f32 to vector<8x128xf32>
    %8 = arith.maximumf %0, %7 : vector<8x128xf32>
    %9 = arith.mulf %0, %1 : vector<8x128xf32>
    %10 = arith.subf %8, %9 : vector<8x128xf32>
    %11 = math.absf %0 : vector<8x128xf32>
    %cst_3 = arith.constant 0.000000e+00 : f32
    %12 = vector.broadcast %cst_3 : f32 to vector<8x128xf32>
    %13 = arith.subf %12, %11 : vector<8x128xf32>
    %14 = math.exp %13 : vector<8x128xf32>
    %cst_4 = arith.constant 1.000000e+00 : f32
    %15 = vector.broadcast %cst_4 : f32 to vector<8x128xf32>
    %16 = arith.addf %15, %14 : vector<8x128xf32>
    %17 = math.log %16 : vector<8x128xf32>
    %18 = arith.addf %10, %17 : vector<8x128xf32>
    %cst_5 = arith.constant dense<0.000000e+00> : vector<128xf32>
    %19 = vector.multi_reduction <add>, %1, %cst_5 [0] : vector<8x128xf32> to vector<128xf32>
    %20 = vector.shape_cast %19 : vector<128xf32> to vector<1x128xf32>
    %cst_6 = arith.constant 2.000000e+00 : f32
    %21 = vector.broadcast %cst_6 : f32 to vector<1x128xf32>
    %22 = arith.mulf %21, %20 : vector<1x128xf32>
    %cst_7 = arith.constant 8.000000e+00 : f32
    %23 = vector.broadcast %cst_7 : f32 to vector<1x128xf32>
    %24 = arith.cmpf oge, %22, %23 : vector<1x128xf32>
    %cst_8 = arith.constant 1.000000e+00 : f32
    %cst_9 = arith.constant 0.000000e+00 : f32
    %25 = vector.broadcast %cst_8 : f32 to vector<1x128xf32>
    %26 = vector.broadcast %cst_9 : f32 to vector<1x128xf32>
    %27 = arith.select %24, %25, %26 : vector<1x128xi1>, vector<1x128xf32>
    %28 = vector.broadcast %27 : vector<1x128xf32> to vector<8x128xf32>
    %29 = arith.cmpf oeq, %1, %28 : vector<8x128xf32>
    %cst_10 = arith.constant 0.000000e+00 : f32
    %30 = vector.shape_cast %6 : vector<8x1xf32> to vector<8x1xf32>
    %31 = vector.broadcast %30 : vector<8x1xf32> to vector<8x128xf32>
    %32 = vector.broadcast %cst_10 : f32 to vector<8x128xf32>
    %33 = arith.select %29, %31, %32 : vector<8x128xi1>, vector<8x128xf32>
    %34 = vector.broadcast %27 : vector<1x128xf32> to vector<8x128xf32>
    %35 = arith.cmpf one, %1, %34 : vector<8x128xf32>
    %cst_11 = arith.constant 0.000000e+00 : f32
    %36 = vector.shape_cast %6 : vector<8x1xf32> to vector<8x1xf32>
    %37 = vector.broadcast %36 : vector<8x1xf32> to vector<8x128xf32>
    %38 = vector.broadcast %cst_11 : f32 to vector<8x128xf32>
    %39 = arith.select %35, %37, %38 : vector<8x128xi1>, vector<8x128xf32>
    %cst_12 = arith.constant dense<0.000000e+00> : vector<128xf32>
    %40 = vector.multi_reduction <add>, %39, %cst_12 [0] : vector<8x128xf32> to vector<128xf32>
    %41 = vector.shape_cast %40 : vector<128xf32> to vector<1x128xf32>
    %c0_13 = arith.constant 0 : index
    %c0_14 = arith.constant 0 : index
    %42 = vector.load %arg4[%c0_13, %c0_14] : memref<8x128xf32, #tpu.memory_space<vmem>>, vector<8x128xf32>
    tpu.vector_store %arg4[%c0_13, %c0_14], %18 {strides = array<i32>} : memref<8x128xf32, #tpu.memory_space<vmem>>, vector<8x128xf32>,
    %c0_15 = arith.constant 0 : index
    %c0_16 = arith.constant 0 : index
    %43 = vector.load %arg5[%c0_15, %c0_16] : memref<8x128xf32, #tpu.memory_space<vmem>>, vector<8x128xf32>
    tpu.vector_store %arg5[%c0_15, %c0_16], %33 {strides = array<i32>} : memref<8x128xf32, #tpu.memory_space<vmem>>, vector<8x128xf32>,
    %cst_17 = arith.constant 0.000000e+00 : f32
    %44 = vector.broadcast %cst_17 : f32 to vector<8x128xf32>
    %c0_18 = arith.constant 0 : index
    %c0_19 = arith.constant 0 : index
    %45 = vector.load %arg7[%c0_18, %c0_19] : memref<8x128xf32, #tpu.memory_space<vmem>>, vector<8x128xf32>
    tpu.vector_store %arg7[%c0_18, %c0_19], %44 {strides = array<i32>} : memref<8x128xf32, #tpu.memory_space<vmem>>, vector<8x128xf32>,
    %46 = tpu.iota {dimensions = array<i32: 0>} : vector<8x8x1xi32>
    %47 = tpu.iota {dimensions = array<i32: 1>} : vector<8x8x1xi32>
    %c0_i32 = arith.constant 0 : i32
    %c1_i32 = arith.constant 1 : i32
    %48 = arith.muli %c0_i32, %c1_i32 : i32
    %c0_i32_20 = arith.constant 0 : i32
    %49 = arith.addi %c0_i32_20, %48 : i32
    %c8_i32_21 = arith.constant 8 : i32
    %50 = arith.muli %49, %c8_i32_21 : i32
    %51 = tpu.assume_multiple %50, 8 : i32
    %52 = arith.index_cast %51 : i32 to index
    %c0_22 = arith.constant 0 : index
    %53 = vector.load %arg4[%52, %c0_22] : memref<8x128xf32, #tpu.memory_space<vmem>>, vector<8x128xf32>
    %54 = arith.index_cast %51 : i32 to index
    %c0_23 = arith.constant 0 : index
    %55 = vector.load %arg5[%54, %c0_23] : memref<8x128xf32, #tpu.memory_space<vmem>>, vector<8x128xf32>
    %cst_24 = arith.constant 0.000000e+00 : f32
    %56 = vector.broadcast %cst_24 : f32 to vector<8x128xf32>
    %c0_25 = arith.constant 0 : index
    %c0_26 = arith.constant 0 : index
    %57 = vector.load %arg6[%c0_25, %c0_26] : memref<8x128xf32, #tpu.memory_space<vmem>>, vector<8x128xf32>
    tpu.vector_store %arg6[%c0_25, %c0_26], %56 {strides = array<i32>} : memref<8x128xf32, #tpu.memory_space<vmem>>, vector<8x128xf32>,
    %c0_i32_27 = arith.constant 0 : i32
    %c1_i32_28 = arith.constant 1 : i32
    %58 = arith.muli %c0_i32_27, %c1_i32_28 : i32
    %c0_i32_29 = arith.constant 0 : i32
    %59 = arith.addi %c0_i32_29, %58 : i32
    %c8_i32_30 = arith.constant 8 : i32
    %60 = arith.muli %59, %c8_i32_30 : i32
    %61 = tpu.assume_multiple %60, 8 : i32
    %62 = arith.index_cast %61 : i32 to index
    %c0_31 = arith.constant 0 : index
    %63 = vector.load %arg4[%62, %c0_31] : memref<8x128xf32, #tpu.memory_space<vmem>>, vector<8x128xf32>
    %64 = arith.index_cast %61 : i32 to index
    %c0_32 = arith.constant 0 : index
    %65 = vector.load %arg5[%64, %c0_32] : memref<8x128xf32, #tpu.memory_space<vmem>>, vector<8x128xf32>
    %66 = vector.shape_cast %63 : vector<8x128xf32> to vector<8x1x128xf32>
    %67 = vector.shape_cast %53 : vector<8x128xf32> to vector<1x8x128xf32>
    %68 = arith.subi %61, %51 : i32
    %69 = vector.broadcast %68 : i32 to vector<8x8x1xi32>
    %70 = arith.addi %46, %69 : vector<8x8x1xi32>
    %71 = arith.cmpi slt, %70, %47 : vector<8x8x1xi32>
    %72 = vector.broadcast %66 : vector<8x1x128xf32> to vector<8x8x128xf32>
    %73 = vector.broadcast %67 : vector<1x8x128xf32> to vector<8x8x128xf32>
    %74 = arith.cmpf ogt, %72, %73 : vector<8x8x128xf32>
    %75 = vector.broadcast %66 : vector<8x1x128xf32> to vector<8x8x128xf32>
    %76 = vector.broadcast %67 : vector<1x8x128xf32> to vector<8x8x128xf32>
    %77 = arith.cmpf oeq, %75, %76 : vector<8x8x128xf32>
    %78 = vector.broadcast %71 : vector<8x8x1xi1> to vector<8x8x128xi1>
    %79 = arith.andi %77, %78 : vector<8x8x128xi1>
    %80 = arith.ori %74, %79 : vector<8x8x128xi1>
    %81 = vector.shape_cast %65 : vector<8x128xf32> to vector<8x1x128xf32>
    %cst_33 = arith.constant 0.000000e+00 : f32
    %82 = vector.shape_cast %81 : vector<8x1x128xf32> to vector<8x1x128xf32>
    %83 = vector.broadcast %82 : vector<8x1x128xf32> to vector<8x8x128xf32>
    %84 = vector.broadcast %cst_33 : f32 to vector<8x8x128xf32>
    %85 = arith.select %80, %83, %84 : vector<8x8x128xi1>, vector<8x8x128xf32>
    %c0_34 = arith.constant 0 : index
    %c0_35 = arith.constant 0 : index
    %86 = vector.load %arg6[%c0_34, %c0_35] : memref<8x128xf32, #tpu.memory_space<vmem>>, vector<8x128xf32>
    %cst_36 = arith.constant dense<0.000000e+00> : vector<8x128xf32>
    %87 = vector.multi_reduction <add>, %85, %cst_36 [0] : vector<8x8x128xf32> to vector<8x128xf32>
    %88 = arith.addf %86, %87 : vector<8x128xf32>
    %c0_37 = arith.constant 0 : index
    %c0_38 = arith.constant 0 : index
    %89 = vector.load %arg6[%c0_37, %c0_38] : memref<8x128xf32, #tpu.memory_space<vmem>>, vector<8x128xf32>
    tpu.vector_store %arg6[%c0_37, %c0_38], %88 {strides = array<i32>} : memref<8x128xf32, #tpu.memory_space<vmem>>, vector<8x128xf32>,
    %c1_i32_39 = arith.constant 1 : i32
    %90 = tpu.iota {dimensions = array<i32: 0>} : vector<8x1xi32>
    %91 = vector.broadcast %51 : i32 to vector<8x1xi32>
    %92 = arith.addi %91, %90 : vector<8x1xi32>
    %c8_i32_40 = arith.constant 8 : i32
    %93 = vector.broadcast %c8_i32_40 : i32 to vector<8x1xi32>
    %94 = arith.cmpi slt, %92, %93 : vector<8x1xi32>
    %95 = arith.extui %94 : vector<8x1xi1> to vector<8x1xi32>
    %96 = arith.sitofp %95 : vector<8x1xi32> to vector<8x1xf32>
    %97 = vector.broadcast %96 : vector<8x1xf32> to vector<8x128xf32>
    %98 = arith.subf %97, %55 : vector<8x128xf32>
    %c0_41 = arith.constant 0 : index
    %c0_42 = arith.constant 0 : index
    %99 = vector.load %arg6[%c0_41, %c0_42] : memref<8x128xf32, #tpu.memory_space<vmem>>, vector<8x128xf32>
    %100 = vector.broadcast %41 : vector<1x128xf32> to vector<8x128xf32>
    %101 = arith.cmpf olt, %99, %100 : vector<8x128xf32>
    %102 = arith.extui %101 : vector<8x128xi1> to vector<8x128xi32>
    %103 = arith.sitofp %102 : vector<8x128xi32> to vector<8x128xf32>
    %104 = arith.mulf %55, %103 : vector<8x128xf32>
    %105 = arith.addf %98, %104 : vector<8x128xf32>
    %106 = arith.mulf %53, %105 : vector<8x128xf32>
    %c0_43 = arith.constant 0 : index
    %c0_44 = arith.constant 0 : index
    %107 = vector.load %arg7[%c0_43, %c0_44] : memref<8x128xf32, #tpu.memory_space<vmem>>, vector<8x128xf32>
    %108 = vector.shape_cast %106 : vector<8x128xf32> to vector<1x8x128xf32>
    %cst_45 = arith.constant dense<0.000000e+00> : vector<8x128xf32>
    %109 = vector.multi_reduction <add>, %108, %cst_45 [0] : vector<1x8x128xf32> to vector<8x128xf32>
    %110 = arith.addf %107, %109 : vector<8x128xf32>
    %c0_46 = arith.constant 0 : index
    %c0_47 = arith.constant 0 : index
    %111 = vector.load %arg7[%c0_46, %c0_47] : memref<8x128xf32, #tpu.memory_space<vmem>>, vector<8x128xf32>
    tpu.vector_store %arg7[%c0_46, %c0_47], %110 {strides = array<i32>} : memref<8x128xf32, #tpu.memory_space<vmem>>, vector<8x128xf32>,
    %c1_i32_48 = arith.constant 1 : i32
    %c0_49 = arith.constant 0 : index
    %c0_50 = arith.constant 0 : index
    %112 = vector.load %arg7[%c0_49, %c0_50] : memref<8x128xf32, #tpu.memory_space<vmem>>, vector<8x128xf32>
    %c0_51 = arith.constant 0 : index
    %c0_52 = arith.constant 0 : index
    %c0_53 = arith.constant 0 : index
    %113 = vector.load %arg3[%c0_51, %c0_52, %c0_53] : memref<1x8x128xf32, #tpu.memory_space<vmem>>, vector<1x8x128xf32>
    %114 = vector.shape_cast %113 : vector<1x8x128xf32> to vector<8x128xf32>
    %115 = vector.shape_cast %112 : vector<8x128xf32> to vector<1x8x128xf32>
    tpu.vector_store %arg3[%c0_51, %c0_52, %c0_53], %115 {strides = array<i32>} : memref<1x8x128xf32, #tpu.memory_space<vmem>>, vector<1x8x128xf32>,
    return
  }
  func.func @transform_0(%arg0: i32) -> (i32, i32) {
    %c0_i32 = arith.constant 0 : i32
    %c0_i32_0 = arith.constant 0 : i32
    return %c0_i32, %arg0 : i32, i32
  }
  func.func @transform_1(%arg0: i32) -> (i32, i32) {
    %c0_i32 = arith.constant 0 : i32
    %c0_i32_0 = arith.constant 0 : i32
    return %c0_i32, %arg0 : i32, i32
  }
  func.func @transform_2(%arg0: i32) -> (i32, i32, i32) {
    %c0_i32 = arith.constant 0 : i32
    %c0_i32_0 = arith.constant 0 : i32
    %c0_i32_1 = arith.constant 0 : i32
    return %arg0, %c0_i32, %c0_i32_0 : i32, i32, i32
  }
}

</mosaic_0001>

<bundles_post_ra>
// kernel: tpu_custom_call.1
= control target key start
LH: loop header
LB: loop body
LE: loop exit
PB: predicated region body
PF: predicated region fallthrough
CT: control target
= control target key end

     0   :  { %7 = vsyncpa [#allocation7], 0  ;;  %s470_s0 = inlined_call_operand.hbm [shape: f32[8,128], index: 0, kind: input, shape index: {}]   ;;  %s471_s1 = inlined_call_operand.hbm [shape: f32[8,128], index: 1, kind: input, shape index: {}]   ;;  %s472_s2 = inlined_call_operand.hbm [shape: f32[1,8,128], index: 2, kind: output, shape index: {}]  }
   0x1   :  { %8 = vsyncpa [#allocation10], 0 }
   0x2   :  { %9 = vsyncpa [#allocation8], 0  ;;  %s15_s11 = sshll.u32 %s470_s0, 4  ;;  %s331_s12 = smov [#allocation6]   ;;  %s16_s11 = int_to_ptr.hbm [resolvable:$true] %s15_s11 }
   0x3   :  { %s17_s13 = sshll.u32 %s331_s12, 4  ;;  %s26_s16 = sshll.u32 %s471_s1, 4  ;;  %s18_s13 = int_to_ptr.vmem [resolvable:$true] %s17_s13  ;;  %s27_s16 = int_to_ptr.hbm [resolvable:$true] %s26_s16 }
   0x4   :  { %20 = dma.hbm_to_vmem [thread:$0]  %s16_s11, 128, %s18_s13, [#allocation7]  }
   0x5   :  { %s332_s17 = smov [#allocation9]  }
   0x6   :  { %s28_s18 = sshll.u32 %s332_s17, 4  ;;  %s29_s18 = int_to_ptr.vmem [resolvable:$true] %s28_s18 }
   0x7   :  { %31 = dma.hbm_to_vmem [thread:$0]  %s27_s16, 128, %s29_s18, [#allocation10]  }
   0x8   :  { %325 = dma.done.wait [#allocation7], 128  }
   0x9   :  { %326 = vsyncadd [#allocation7], 4294967168 }
   0xa   :  { %327 = dma.done.wait [#allocation10], 128  }
   0xb   :  { %328 = vsyncadd [#allocation10], 4294967168  ;;  %v40_v0 = vld [vmem:[#allocation6] sm:$0xff]  ;;  %v41_v1 = vld [vmem:[#allocation9] sm:$0xff]  ;;  %v42_v18 = vlaneseq  ;;  %v333_v21 = vmov 0.0   ;;  %s334_s0 = smov [#allocation11]  }
   0xc   :  { %v50_v2 = vand.u32 2147483647, %v40_v0  ;;  %v58_v3 = vrot.slane %v41_v1, 4  ;;  %v47_v13 = vmax.f32 %v40_v0, 0.0  ;;  %v48_v14 = vmul.f32 %v41_v1, %v40_v0  ;;  %s231_s1 = sshll.u32 %s334_s0, 4  ;;  %s233_s21 = sshll.u32 %s472_s2, 4  ;;  %s232_s1 = int_to_ptr.vmem [resolvable:$true] %s231_s1  ;;  %s234_s21 = int_to_ptr.hbm [resolvable:$true] %s233_s21 }
   0xd   :  { %v43_v23 = vshrl.u32 %v42_v18, 7 }
   0xe   :  { %v51_v4 = vsub.f32 0.0, %v50_v2  ;;  %v59_v5 = vadd.f32 %v58_v3, %v41_v1  ;;  %v49_v16 = vsub.f32 %v47_v13, %v48_v14 }
   0xf   :  { %vm93_vm3 = vcmp.gt.s32.totalorder %v43_v23, 0  ;;  %vm94_vm4 = vcmp.gt.s32.totalorder %v43_v23, 1  ;;  %vm95_vm5 = vcmp.gt.s32.totalorder %v43_v23, 2  ;;  %vm96_vm9 = vcmp.gt.s32.totalorder %v43_v23, 3 }
  0x10   :  { %v52_v6 = vmul.f32 1.442695, %v51_v4  ;;  %v60_v7 = vrot.slane %v59_v5, 2  ;;  %vm97_vm12 = vcmp.gt.s32.totalorder %v43_v23, 4  ;;  %vm98_vm15 = vcmp.gt.s32.totalorder %v43_v23, 5 }
  0x12   :  { %249 = vpow2.f32 %v52_v6  ;;  %v61_v8 = vadd.f32 %v60_v7, %v59_v5 }
  0x14   :  { %v62_v9 = vrot.slane %v61_v8, 1 }
  0x16   :  { %v63_v12 = vadd.f32 %v62_v9, %v61_v8 }
  0x18   :  { %v250_v10 = vpop.eup %249  ;;  %v64_v15 = vmul.f32 2.0, %v63_v12 }
  0x19   :  { %v54_v11 = vadd.f32 1.0, %v250_v10 }
  0x1a   :  { %vm65_vm0 = vcmp.ge.f32.partialorder %v64_v15, 8.0 }
  0x1b   :  { %251 = vlog2.f32 %v54_v11  ;;  %v66_v22 = vsel %vm65_vm0, 1.0, %v333_v21 }
  0x1c   :  { %vm67_vm1 = vcmp.eq.f32.partialorder %v41_v1, %v66_v22  ;;  %vm69_vm2 = vcmp.ne.f32.partialorder %v41_v1, %v66_v22 }
  0x1d   :  { %v70_v34 = vsel %vm69_vm2, 1.0, %v333_v21  ;;  %v368_v36 = vsel %vm67_vm1, 1.0, %v333_v21  ;;  %vm99_vm2 = vcmp.gt.s32.totalorder %v43_v23, 6 }
  0x1e   :  { %v71_v39 = vrot.slane %v70_v34, 4  ;;  %v166_v42 = vrot.slane %v368_v36, 1  ;;  %v167_v44 = vrot.slane %v368_v36, 2  ;;  %v168_v46 = vrot.slane %v368_v36, 3 }
  0x1f   :  { %v173_v50 = vperm.slane %v368_v36, 0  ;;  %v169_v52 = vrot.slane %v368_v36, 4  ;;  %v170_v56 = vrot.slane %v368_v36, 5  ;;  %v171_v62 = vrot.slane %v368_v36, 6 }
  0x20   :  { %v72_v47 = vadd.f32 %v71_v39, %v70_v34  ;;  %v174_v53 = vperm.slane %v166_v42, 0  ;;  %v175_v55 = vperm.slane %v167_v44, 0  ;;  %v176_v57 = vperm.slane %v168_v46, 0 }
  0x21   :  { %v252_v17 = vpop.eup %251  ;;  %v177_v63 = vperm.slane %v169_v52, 0  ;;  %v172_v5 = vrot.slane %v368_v36, 7  ;;  %v178_v6 = vperm.slane %v170_v56, 0  ;;  %v179_v11 = vperm.slane %v171_v62, 0 }
  0x22   :  { %v56_v19 = vmul.f32 0.6931472, %v252_v17  ;;  %v73_v58 = vrot.slane %v72_v47, 2 }
  0x23   :  { %v180_v14 = vperm.slane %v172_v5, 0 }
  0x24   :  { %v356_v20 = vadd.f32 %v56_v19, %v49_v16  ;;  %v74_v8 = vadd.f32 %v73_v58, %v72_v47 }
  0x26   :  { %v86_v24 = vrot.slane %v356_v20, 1  ;;  %v87_v25 = vrot.slane %v356_v20, 2  ;;  %v88_v26 = vrot.slane %v356_v20, 3  ;;  %v89_v27 = vrot.slane %v356_v20, 4 }
  0x27   :  { %v90_v28 = vrot.slane %v356_v20, 5  ;;  %v91_v29 = vrot.slane %v356_v20, 6  ;;  %v101_v30 = vperm.slane %v356_v20, 0  ;;  %v92_v59 = vrot.slane %v356_v20, 7 }
  0x28   :  { %v102_v31 = vperm.slane %v86_v24, 0  ;;  %v103_v32 = vperm.slane %v87_v25, 0  ;;  %v104_v33 = vperm.slane %v88_v26, 0  ;;  %v105_v35 = vperm.slane %v89_v27, 0 }
  0x29   :  { %v106_v37 = vperm.slane %v90_v28, 0  ;;  %v107_v38 = vperm.slane %v91_v29, 0  ;;  %vm125_vm6 = vcmp.eq.f32.partialorder %v101_v30, %v356_v20  ;;  %v108_v9 = vperm.slane %v92_v59, 0 }
  0x2a   :  { %vm126_vm7 = vcmp.eq.f32.partialorder %v102_v31, %v356_v20  ;;  %vm127_vm8 = vcmp.eq.f32.partialorder %v103_v32, %v356_v20  ;;  %vm128_vm10 = vcmp.eq.f32.partialorder %v104_v33, %v356_v20  ;;  %vm374_vm11 = vmand %vm125_vm6, %vm93_vm3  ;;  %vm129_vm13 = vcmp.eq.f32.partialorder %v105_v35, %v356_v20 }
  0x2b   :  { %vm379_vm14 = vmand %vm126_vm7, %vm94_vm4  ;;  %vm130_vm0 = vcmp.eq.f32.partialorder %v106_v37, %v356_v20  ;;  %vm131_vm3 = vcmp.eq.f32.partialorder %v107_v38, %v356_v20  ;;  %vm398_vm4 = vcmp.gt.f32.partialorder %v101_v30, %v356_v20  ;;  %vm118_vm7 = vcmp.gt.f32.partialorder %v102_v31, %v356_v20 }
  0x2c   :  { %vm386_vm1 = vmand %vm127_vm8, %vm95_vm5  ;;  %v75_v16 = vrot.slane %v74_v8, 1  ;;  %v212_v26 = vsub.f32 1.0, %v368_v36 }
  0x2d   :  { %vm392_vm6 = vmand %vm128_vm10, %vm96_vm9  ;;  %vm119_vm9 = vcmp.gt.f32.partialorder %v103_v32, %v356_v20 }
  0x2e   :  { %vm402_vm5 = vmand %vm129_vm13, %vm97_vm12  ;;  %vm120_vm12 = vcmp.gt.f32.partialorder %v104_v33, %v356_v20  ;;  %v76_v23 = vadd.f32 %v75_v16, %v74_v8 }
  0x2f   :  { %vm408_vm8 = vmand %vm130_vm0, %vm98_vm15  ;;  %vm121_vm15 = vcmp.gt.f32.partialorder %v105_v35, %v356_v20 }
  0x30   :  { %vm414_vm10 = vmand %vm131_vm3, %vm99_vm2  ;;  %vm122_vm2 = vcmp.gt.f32.partialorder %v106_v37, %v356_v20 }
  0x31   :  { %vm157_vm13 = vmor %vm398_vm4, %vm374_vm11 }
  0x32   :  { %vm158_vm0 = vmor %vm118_vm7, %vm379_vm14  ;;  %v189_v60 = vsel %vm157_vm13, %v173_v50, 0.0  ;;  %vm123_vm14 = vcmp.gt.f32.partialorder %v107_v38, %v356_v20 }
  0x33   :  { %vm431_vm3 = vmor %vm119_vm9, %vm386_vm1  ;;  %v190_v0 = vsel %vm158_vm0, %v174_v53, 0.0 }
  0x34   :  { %vm438_vm11 = vmor %vm120_vm12, %vm392_vm6  ;;  %v191_v2 = vsel %vm431_vm3, %v175_v55, 0.0  ;;  %v198_v3 = vadd.f32 %v190_v0, %v189_v60 }
  0x35   :  { %vm447_vm1 = vmor %vm121_vm15, %vm402_vm5  ;;  %v192_v7 = vsel %vm438_vm11, %v176_v57, 0.0  ;;  %vm124_vm5 = vcmp.gt.f32.partialorder %v108_v9, %v356_v20 }
  0x36   :  { %vm162_vm6 = vmor %vm122_vm2, %vm408_vm8  ;;  %v199_v10 = vadd.f32 %v198_v3, %v191_v2  ;;  %v193_v12 = vsel %vm447_vm1, %v177_v63, 0.0  ;;  %v196_v22 = vsel %vm124_vm5, %v180_v14, 0.0 }
  0x37   :  { %vm163_vm4 = vmor %vm123_vm14, %vm414_vm10  ;;  %v194_v15 = vsel %vm162_vm6, %v178_v6, 0.0 }
  0x38   :  { %v200_v13 = vadd.f32 %v199_v10, %v192_v7  ;;  %v195_v18 = vsel %vm163_vm4, %v179_v11, 0.0 }
  0x3a   :  { %v201_v17 = vadd.f32 %v200_v13, %v193_v12 }
  0x3c   :  { %v202_v19 = vadd.f32 %v201_v17, %v194_v15 }
  0x3e   :  { %v203_v24 = vadd.f32 %v202_v19, %v195_v18 }
  0x40   :  { %v204_v25 = vadd.f32 %v203_v24, %v196_v22 }
  0x42   :  { %vm214_vm7 = vcmp.lt.f32.partialorder %v204_v25, %v76_v23 }
  0x43   :  { %v244_v27 = vsel %vm214_vm7, 1.0, %v333_v21 }
  0x44   :  { %v217_v28 = vmul.f32 %v244_v27, %v368_v36 }
  0x46   :  { %v218_v29 = vadd.f32 %v217_v28, %v212_v26 }
  0x48   :  { %v219_v30 = vmul.f32 %v218_v29, %v356_v20 }
  0x4a   :  { %225 = vst [vmem:[#allocation11] sm:$0xff] %v219_v30 }
  0x4b   :  { %236 = dma.vmem_to_hbm [thread:$0]  %s232_s1, 128, %s234_s21, [#allocation8]  }
  0x4c   :  { %329 = dma.done.wait [#allocation8], 128  }
  0x4d   :  { %330 = vsyncadd [#allocation8], 4294967168 }
  0x4e   :  { %241 = vsyncpa [#allocation7], 1 }
  0x4f   :  { %242 = vsyncpa [#allocation10], 1 }
  0x50   :  { %243 = vsyncpa [#allocation8], 1 }

</bundles_post_ra>
